<compile_context>
chip_gen: v6e
topology: v6e:2x2x1
jax: 0.10.0
libtpu: 0.0.40
codegen_flags: <defaults>
</compile_context>

<pallas_src>
import jax
import jax.numpy as jnp
from jax.experimental import pallas as pl
from jax.experimental.pallas import tpu as pltpu


# ----------------------------- kernel -------------------------------------- #

def _normalize_kernel(a_ref, b_ref, x_ref, o_ref):
    # a_ref, b_ref: (Rb, 1)  per-row fused coefficients (scale/std, -mean/std)
    # x_ref, o_ref: (Rb, Cb) tile of the flattened (N*C, H*W) input / output
    o_ref[...] = x_ref[...] * a_ref[...] + b_ref[...]


# ----------------------------- helpers ------------------------------------- #

def _pick_blocks(nc, hw, dtype_bytes=4, target_block_bytes=8 * 1024 * 1024):
    """Pick (row_block, col_block): col_block is the full HW (best lane
    density) unless a single 8-row strip would blow the ~8 MiB tile budget,
    in which case it is a multiple of 128; row_block is the full NC for small
    inputs, else a multiple of 8 sized so one tile is ~target_block_bytes."""
    max_cols_for_8_rows = max(1, target_block_bytes // (8 * dtype_bytes))
    if hw <= max_cols_for_8_rows:
        cb = hw                                   # full extent: always legal
    else:
        cb = max((max_cols_for_8_rows // 128) * 128, 128)

    max_rows = max(1, target_block_bytes // max(1, cb * dtype_bytes))
    if nc <= max_rows or nc <= 8:
        rb = nc                                   # full extent: always legal
    else:
        rb = max((max_rows // 8) * 8, 8)
    return rb, cb


# ----------------------------- wrapper ------------------------------------- #

def _normalize_impl(x, mean, std):
    """x: (N, C, H, W) float32, mean/std: (C,) float32 -> (N, C, H, W)."""
    N, C, H, W = x.shape
    NC, HW = N * C, H * W

    x2 = x.astype(jnp.float32).reshape(NC, HW)

    # Global max via XLA's fused reduce; decide the /255 branch as a scalar.
    maxv = jnp.max(x2)
    scale = jnp.where(maxv > jnp.float32(1.0),
                      jnp.float32(1.0 / 255.0), jnp.float32(1.0))

    # Fold (x*scale - mean)/std  ->  x*a + b  with one (a, b) per row of the
    # (N*C, HW) view.
    inv_std = jnp.float32(1.0) / std.astype(jnp.float32)          # (C,)
    a = scale * inv_std                                           # (C,)
    b = -mean.astype(jnp.float32) * inv_std                       # (C,)
    a_rows = jnp.tile(a, N).reshape(NC, 1)                        # (N*C, 1)
    b_rows = jnp.tile(b, N).reshape(NC, 1)                        # (N*C, 1)

    rb, cb = _pick_blocks(NC, HW)
    grid = (pl.cdiv(NC, rb), pl.cdiv(HW, cb))

    out2 = pl.pallas_call(
        _normalize_kernel,
        out_shape=jax.ShapeDtypeStruct((NC, HW), jnp.float32),
        grid=grid,
        in_specs=[
            pl.BlockSpec((rb, 1), lambda i, j: (i, 0)),    # a (per-row coeff)
            pl.BlockSpec((rb, 1), lambda i, j: (i, 0)),    # b (per-row coeff)
            pl.BlockSpec((rb, cb), lambda i, j: (i, j)),   # x tile
        ],
        out_specs=pl.BlockSpec((rb, cb), lambda i, j: (i, j)),
        compiler_params=pltpu.CompilerParams(
            dimension_semantics=("parallel", "parallel"),
            vmem_limit_bytes=48 * 1024 * 1024,             # safe on v7x 64 MiB
        ),
    )(a_rows, b_rows, x2)

    return out2.reshape(N, C, H, W)


normalize_forward = jax.jit(_normalize_impl)


# ----------------------------- main ----------------------------------------- #

if __name__ == "__main__":
    key = jax.random.PRNGKey(0)

    # Small NCHW input (module hardcodes 3 channels); values in [0, 255) so
    # the /255 branch is exercised.
    N, C, H, W = 2, 3, 16, 16
    x = jax.random.uniform(key, (N, C, H, W), dtype=jnp.float32,
                           minval=0.0, maxval=255.0)

    # Deterministic buffers (len-3 mean/std, ImageNet-style values).
    mean = jnp.array([0.485, 0.456, 0.406], dtype=jnp.float32)
    std = jnp.array([0.229, 0.224, 0.225], dtype=jnp.float32)

    out = normalize_forward(x, mean, std)
    out = jax.block_until_ready(out)

    # Silent correctness check against a pure-JAX reference.
    x_ref = jnp.where(jnp.max(x) > 1.0, x / 255.0, x)
    ref = (x_ref - mean.reshape(1, C, 1, 1)) / std.reshape(1, C, 1, 1)
    assert out.shape == (N, C, H, W)
    assert jnp.allclose(out, ref, rtol=1e-5, atol=1e-6)

    print("KERNEL_OK")
</pallas_src>

<mosaic_0001>
module attributes {stable_mosaic.version = 11 : i64} {
  func.func @_normalize_kernel(%arg0: i32, %arg1: i32, %arg2: memref<6x1xf32, #tpu.memory_space<vmem>>, %arg3: memref<6x1xf32, #tpu.memory_space<vmem>>, %arg4: memref<6x256xf32, #tpu.memory_space<vmem>>, %arg5: memref<6x256xf32, #tpu.memory_space<vmem>>) attributes {dimension_semantics = [#tpu.dimension_semantics<parallel>, #tpu.dimension_semantics<parallel>], iteration_bounds = array<i64: 1, 1>, scalar_prefetch = 0 : i64, scratch_operands = 0 : i64, tpu.core_type = #tpu.core_type<tc>, window_params = [{transform_indices = @transform_0, window_bounds = array<i64: 6, 1>}, {transform_indices = @transform_1, window_bounds = array<i64: 6, 1>}, {transform_indices = @transform_2, window_bounds = array<i64: 6, 256>}, {transform_indices = @transform_3, window_bounds = array<i64: 6, 256>}]} {
    %c0 = arith.constant 0 : index
    %c0_0 = arith.constant 0 : index
    %0 = vector.load %arg4[%c0, %c0_0] : memref<6x256xf32, #tpu.memory_space<vmem>>, vector<6x256xf32>
    %c0_1 = arith.constant 0 : index
    %c0_2 = arith.constant 0 : index
    %1 = vector.load %arg2[%c0_1, %c0_2] : memref<6x1xf32, #tpu.memory_space<vmem>>, vector<6x1xf32>
    %2 = vector.broadcast %1 : vector<6x1xf32> to vector<6x256xf32>
    %3 = arith.mulf %0, %2 : vector<6x256xf32>
    %c0_3 = arith.constant 0 : index
    %c0_4 = arith.constant 0 : index
    %4 = vector.load %arg3[%c0_3, %c0_4] : memref<6x1xf32, #tpu.memory_space<vmem>>, vector<6x1xf32>
    %5 = vector.broadcast %4 : vector<6x1xf32> to vector<6x256xf32>
    %6 = arith.addf %3, %5 : vector<6x256xf32>
    %c0_5 = arith.constant 0 : index
    %c0_6 = arith.constant 0 : index
    %7 = vector.load %arg5[%c0_5, %c0_6] : memref<6x256xf32, #tpu.memory_space<vmem>>, vector<6x256xf32>
    tpu.vector_store %arg5[%c0_5, %c0_6], %6 {strides = array<i32>} : memref<6x256xf32, #tpu.memory_space<vmem>>, vector<6x256xf32>,
    return
  }
  func.func @transform_0(%arg0: i32, %arg1: i32) -> (i32, i32) {
    %c0_i32 = arith.constant 0 : i32
    %c0_i32_0 = arith.constant 0 : i32
    return %arg0, %c0_i32 : i32, i32
  }
  func.func @transform_1(%arg0: i32, %arg1: i32) -> (i32, i32) {
    %c0_i32 = arith.constant 0 : i32
    %c0_i32_0 = arith.constant 0 : i32
    return %arg0, %c0_i32 : i32, i32
  }
  func.func @transform_2(%arg0: i32, %arg1: i32) -> (i32, i32) {
    %c0_i32 = arith.constant 0 : i32
    return %arg0, %arg1 : i32, i32
  }
  func.func @transform_3(%arg0: i32, %arg1: i32) -> (i32, i32) {
    %c0_i32 = arith.constant 0 : i32
    return %arg0, %arg1 : i32, i32
  }
}

</mosaic_0001>

<bundles_post_ra>
// kernel: tile.0
= control target key start
LH: loop header
LB: loop body
LE: loop exit
PB: predicated region body
PF: predicated region fallthrough
CT: control target
= control target key end

     0   :  { %vm8_vm0 = vcmask 7168   ;;  %s27_s10 = smov 126   ;;  %s50_s0 = inlined_call_operand.vmem [shape: f32[2,3], index: 0, kind: input, shape index: {}]   ;;  %s51_s1 = inlined_call_operand.vmem [shape: f32[6,1], index: 1, kind: output, shape index: {}]  }
   0x1   :  { %v5_v0 = vld [vmem:[%s50_s0] sm:$0x3]  ;;  %s26_s0 = smov 127  }
   0x2   :  { %6 = vst [vmem:[#allocation0] sm:$0x3] %v5_v0 }
   0x9   :  { %v10_v1 = vld [vmem:[#allocation0] sm:$0x3]  }
   0xa   :  { %v7_v2 = vld [vmem:[#allocation0] sm:$0x3]   ;;  %11 = vrot.lane.b32.xlu0 %v10_v1, %s26_s0 }
   0xb   :  { %9 = vst.msk [vmem:[%s51_s1] ss:$3 sm:$0x3] %vm8_vm0, %v7_v2   ;;  %v16_v3 = vld [vmem:[#allocation0] sm:$0x3]  }
   0xe   :  { %17 = vrot.lane.b32.xlu0 %v16_v3, %s27_s10 }
  0x7c   :  { %v12_v4 = vpop.permute.xlu0 %11  }
  0x7d   :  { %22 = vst.msk [vmem:[%s51_s1 + $0x1] ss:$3 sm:$0x3] %vm8_vm0, %v12_v4  }
  0x80   :  { %v18_v5 = vpop.permute.xlu0 %17  }
  0x81   :  { %23 = vst.msk [vmem:[%s51_s1 + $0x2] ss:$3 sm:$0x3] %vm8_vm0, %v18_v5  }

// kernel: tile.18
= control target key start
LH: loop header
LB: loop body
LE: loop exit
PB: predicated region body
PF: predicated region fallthrough
CT: control target
= control target key end

     0   :  { %s22_s0 = inlined_call_operand.vmem [shape: f32[3], index: 0, kind: input, shape index: {}]   ;;  %s23_s1 = inlined_call_operand.vmem [shape: f32[2,3], index: 1, kind: output, shape index: {}]  }
   0x1   :  { %v4_v0 = vld [vmem:[%s22_s0] ss:$0 sm:$0xff] }
   0x2   :  { %5 = vst [vmem:[%s23_s1] sm:$0x3] %v4_v0 }

// kernel: _normalize_impl.1
= control target key start
LH: loop header
LB: loop body
LE: loop exit
PB: predicated region body
PF: predicated region fallthrough
CT: control target
= control target key end

     0   :  { %v40_v0 = vmov 0   ;;  %s79_s0 = inlined_call_operand.vmem [shape: f32[6,1], index: 0, kind: input, shape index: {}]   ;;  %s80_s1 = inlined_call_operand.vmem [shape: f32[6,1], index: 1, kind: input, shape index: {}]   ;;  %s81_s2 = inlined_call_operand.vmem [shape: f32[6,256], index: 2, kind: input, shape index: {}]   ;;  %s82_s3 = inlined_call_operand.vmem [shape: f32[6,256], index: 3, kind: output, shape index: {}]  }
   0x1   :  { %39 = vset.pattern.permute.xlu0 %v40_v0  ;;  %v16_v1 = vld [vmem:[%s79_s0] sm:$0x3f]  ;;  %v15_v4 = vld [vmem:[%s81_s2 + $0x8] sm:$0x3f] }
   0x2   :  { %19 = vperm.xlu0 %39, %v16_v1   ;;  %v24_v2 = vld [vmem:[%s80_s1] sm:$0x3f] }
   0x3   :  { %v14_v3 = vld [vmem:[%s81_s2] sm:$0x3f] }
   0x6   :  { %27 = vperm.xlu0 %39, %v24_v2  }
  0x7d   :  { %v20_v5 = vpop.permute.xlu0 %19 }
  0x7e   :  { %v22_v6 = vmul.f32 %v20_v5, %v14_v3  ;;  %v23_v7 = vmul.f32 %v20_v5, %v15_v4 }
  0x81   :  { %v28_v8 = vpop.permute.xlu0 %27 }
  0x82   :  { %v30_v9 = vadd.f32 %v28_v8, %v22_v6  ;;  %v31_v10 = vadd.f32 %v28_v8, %v23_v7 }
  0x84   :  { %32 = vst [vmem:[%s82_s3] sm:$0x3f] %v30_v9  ;;  %33 = vst [vmem:[%s82_s3 + $0x8] sm:$0x3f] %v31_v10 }

</bundles_post_ra>
